<compile_context>
chip_gen: v7x
topology: tpu7x:2x2x1
jax: 0.10.0
libtpu: 0.0.40
codegen_flags: <defaults>
</compile_context>

<pallas_src>
import functools

import jax
import jax.numpy as jnp
from jax.experimental import pallas as pl
from jax.experimental.pallas import tpu as pltpu

# Default SPP kernel sizes; no learnable parameters in this module.
K1, K2, K3 = 5, 9, 13


def _spp_kernel(x_ref, o_ref, *, k1, k2, k3, H, W, cascade, use_xlu_roll):
    """One grid step: a (TC, H*W) channel-flattened tile -> 4 stacked pools."""
    x = x_ref[0]                                    # (TC, H*W), lane-dense
    HW = H * W
    neg_inf = jnp.array(-jnp.inf, dtype=x.dtype)    # scalar splat, no block-sized slab

    # Identity slot of the concat first, so x's live range ends immediately.
    o_ref[0, 3] = x

    # Hoisted boundary masks: one int compare per (direction, shift), at
    # (1, HW) width, shared across all pool stages below (selects broadcast
    # the masks along sublanes).
    p1, p2, p3 = k1 // 2, k2 // 2, k3 // 2
    p_max = p1 if cascade else max(p1, p2, p3)
    idx = jax.lax.broadcasted_iota(jnp.int32, (1, HW), 1)      # flat h*W + w
    wpos = jax.lax.rem(idx, W)                                  # w coordinate
    h_plus = {s: idx < (HW - s * W) for s in range(1, p_max + 1)}
    h_minus = {s: idx >= (s * W) for s in range(1, p_max + 1)}
    w_plus = {s: wpos < (W - s) for s in range(1, p_max + 1)}
    w_minus = {s: wpos >= s for s in range(1, p_max + 1)}

    if use_xlu_roll:
        # XLU lane rotate (own VLIW slot); jnp.roll-compatible, positive shifts.
        def roll(v, shift):
            return pltpu.roll(v, shift % HW, axis=1)
    else:
        # Fallback when HW is not lane-aligned (HW % 128 != 0).
        def roll(v, shift):
            return jnp.roll(v, shift, axis=1)

    def hpass(v, acc, s_lo, s_hi):
        """Extend a running H-direction max `acc` with row shifts s_lo..s_hi of v."""
        for s in range(s_lo, s_hi + 1):
            down = jnp.where(h_plus[s], roll(v, -s * W), neg_inf)
            up = jnp.where(h_minus[s], roll(v, s * W), neg_inf)
            acc = jnp.maximum(acc, jnp.maximum(down, up))
        return acc

    def wpass(v, p):
        """W-direction max over +-p columns; (idx % W) mask stops row crossing."""
        acc = v
        for s in range(1, p + 1):
            right = jnp.where(w_plus[s], roll(v, -s), neg_inf)
            left = jnp.where(w_minus[s], roll(v, s), neg_inf)
            acc = jnp.maximum(acc, jnp.maximum(right, left))
        return acc

    def pool(v, p):
        # Separable same-size max pool (stride 1, pad p, -inf padding).
        return wpass(hpass(v, v, 1, p), p)

    if cascade:
        # SPPF identity: pool_k . pool_k == pool_{2k-1}; three stages == pool_{3k-2}.
        out1 = pool(x, p1)
        o_ref[0, 2] = out1
        out2 = pool(out1, p1)
        o_ref[0, 1] = out2
        o_ref[0, 0] = pool(out2, p1)
    elif p1 <= p2 <= p3:
        # Generic path: share the H-direction passes incrementally across k1<=k2<=k3.
        h1 = hpass(x, x, 1, p1)
        o_ref[0, 2] = wpass(h1, p1)
        h2 = hpass(x, h1, p1 + 1, p2)
        o_ref[0, 1] = wpass(h2, p2)
        h3 = hpass(x, h2, p2 + 1, p3)
        o_ref[0, 0] = wpass(h3, p3)
    else:
        # Unsorted kernel sizes: independent pools.
        o_ref[0, 2] = pool(x, p1)
        o_ref[0, 1] = pool(x, p2)
        o_ref[0, 0] = pool(x, p3)


def _pick_channel_block(C, plane_bytes, itemsize, budget):
    """Channels per grid step: largest divisor of C whose input block fits
    `budget` bytes, preferring sublane-packed multiples (8 f32 / 16 bf16 /
    32 int8).  Never silently exceeds the budget."""
    sub = max(8, 32 // max(itemsize, 1))
    max_tc = max(1, int(budget) // max(plane_bytes, 1))
    if C <= max_tc:
        return C                                    # whole channel dim: always legal
    cands = [d for d in range(sub, max_tc + 1, sub) if C % d == 0]
    if cands:
        return max(cands)
    cands = [d for d in range(1, max_tc + 1) if C % d == 0]
    return max(cands)                               # >= 1 (1 always divides C)


def spp_block(x, k1=K1, k2=K2, k3=K3, *, input_block_budget=1 << 20):
    """x: (B, C, H, W) -> (B, 4*C, H, W) = cat([pool_k3, pool_k2, pool_k1, x], ch)."""
    B, C, H, W = x.shape
    assert jnp.issubdtype(x.dtype, jnp.floating), "-inf 'same' padding needs a float dtype"
    for k in (k1, k2, k3):
        assert k % 2 == 1, "MaxPool2d(k, stride=1, pad=k//2) 'same' semantics need odd k"
    cascade = (k2 == 2 * k1 - 1) and (k3 == 3 * k1 - 2)

    HW = H * W
    itemsize = jnp.dtype(x.dtype).itemsize
    # ~1 MiB of input per step -> total VMEM footprint ~14-16x that
    # (2x double-buffered in, 2x 4x-sized out, live temps), comfortably under
    # the 32 MiB scoped limit requested below on every generation
    # (v5e/v6e: 128 MiB physical VMEM, v7x: 64 MiB).
    TC = _pick_channel_block(C, HW * itemsize, itemsize, input_block_budget)
    assert C % TC == 0

    use_xlu_roll = (HW % 128 == 0)   # lane-rotate path; slice/concat fallback otherwise

    xf = x.reshape(B, C, HW)         # free: contiguous merge of H, W

    out = pl.pallas_call(
        functools.partial(_spp_kernel, k1=k1, k2=k2, k3=k3, H=H, W=W,
                          cascade=cascade, use_xlu_roll=use_xlu_roll),
        out_shape=jax.ShapeDtypeStruct((B, 4, C, HW), x.dtype),
        grid_spec=pltpu.PrefetchScalarGridSpec(
            num_scalar_prefetch=0,
            grid=(B, C // TC),
            in_specs=[pl.BlockSpec((1, TC, HW), lambda b, c: (b, c, 0))],
            out_specs=pl.BlockSpec((1, 4, TC, HW), lambda b, c: (b, 0, c, 0)),
        ),
        compiler_params=pltpu.CompilerParams(
            dimension_semantics=("parallel", "parallel"),
            vmem_limit_bytes=32 * 1024 * 1024),
    )(xf)

    # (B, 4, C, H*W) -> (B, 4C, H, W): contiguous split/merge == the channel
    # concat [p3, p2, p1, x], with no extra HBM pass.
    return out.reshape(B, 4 * C, H, W)


def _spp_reference(x, k1=K1, k2=K2, k3=K3):
    """Pure-JAX reference mirroring PyTorch MaxPool2d(k, stride=1, pad=k//2)."""
    def pool(v, k):
        p = k // 2
        return jax.lax.reduce_window(
            v, -jnp.inf, jax.lax.max,
            window_dimensions=(1, 1, k, k),
            window_strides=(1, 1, 1, 1),
            padding=[(0, 0), (0, 0), (p, p), (p, p)])
    return jnp.concatenate([pool(x, k3), pool(x, k2), pool(x, k1), x], axis=1)


if __name__ == "__main__":
    key = jax.random.PRNGKey(0)
    B, C, H, W = 2, 4, 16, 16
    x = jax.random.normal(key, (B, C, H, W), dtype=jnp.float32)

    # Default SPP sizes (5, 9, 13) -> SPPF cascade path.
    out = jax.block_until_ready(spp_block(x))
    ref = _spp_reference(x)
    assert out.shape == (B, 4 * C, H, W), out.shape
    assert out.dtype == jnp.float32
    assert jnp.allclose(out, ref, atol=1e-6, rtol=1e-6), "mismatch vs reference (5/9/13)"

    # Non-cascade sizes -> shared-H generic path.
    out2 = jax.block_until_ready(spp_block(x, 3, 5, 9))
    ref2 = _spp_reference(x, 3, 5, 9)
    assert jnp.allclose(out2, ref2, atol=1e-6, rtol=1e-6), "mismatch vs reference (3/5/9)"

    print("KERNEL_OK")
</pallas_src>

<mosaic_0001>
module attributes {stable_mosaic.version = 11 : i64} {
  func.func @_spp_kernel(%arg0: i32, %arg1: i32, %arg2: memref<1x4x256xf32, #tpu.memory_space<vmem>>, %arg3: memref<1x4x4x256xf32, #tpu.memory_space<vmem>>) attributes {dimension_semantics = [#tpu.dimension_semantics<parallel>, #tpu.dimension_semantics<parallel>], iteration_bounds = array<i64: 2, 1>, scalar_prefetch = 0 : i64, scratch_operands = 0 : i64, tpu.core_type = #tpu.core_type<tc>, window_params = [{transform_indices = @transform_0, window_bounds = array<i64: 1, 4, 256>}, {transform_indices = @transform_1, window_bounds = array<i64: 1, 4, 4, 256>}]} {
    %c0 = arith.constant 0 : index
    %c0_0 = arith.constant 0 : index
    %c0_1 = arith.constant 0 : index
    %0 = vector.load %arg2[%c0, %c0_0, %c0_1] : memref<1x4x256xf32, #tpu.memory_space<vmem>>, vector<1x4x256xf32>
    %1 = vector.shape_cast %0 : vector<1x4x256xf32> to vector<4x256xf32>
    %c0_2 = arith.constant 0 : index
    %c3 = arith.constant 3 : index
    %c0_3 = arith.constant 0 : index
    %c0_4 = arith.constant 0 : index
    %2 = vector.load %arg3[%c0_2, %c3, %c0_3, %c0_4] : memref<1x4x4x256xf32, #tpu.memory_space<vmem>>, vector<1x1x4x256xf32>
    %3 = vector.shape_cast %2 : vector<1x1x4x256xf32> to vector<4x256xf32>
    %4 = vector.shape_cast %1 : vector<4x256xf32> to vector<1x1x4x256xf32>
    tpu.vector_store %arg3[%c0_2, %c3, %c0_3, %c0_4], %4 {strides = array<i32>} : memref<1x4x4x256xf32, #tpu.memory_space<vmem>>, vector<1x1x4x256xf32>,
    %5 = tpu.iota {dimensions = array<i32: 1>} : vector<1x256xi32>
    %c16_i32 = arith.constant 16 : i32
    %6 = vector.broadcast %c16_i32 : i32 to vector<1x256xi32>
    %7 = arith.remsi %5, %6 : vector<1x256xi32>
    %c240_i32 = arith.constant 240 : i32
    %8 = vector.broadcast %c240_i32 : i32 to vector<1x256xi32>
    %9 = arith.cmpi slt, %5, %8 : vector<1x256xi32>
    %c224_i32 = arith.constant 224 : i32
    %10 = vector.broadcast %c224_i32 : i32 to vector<1x256xi32>
    %11 = arith.cmpi slt, %5, %10 : vector<1x256xi32>
    %c16_i32_5 = arith.constant 16 : i32
    %12 = vector.broadcast %c16_i32_5 : i32 to vector<1x256xi32>
    %13 = arith.cmpi sge, %5, %12 : vector<1x256xi32>
    %c32_i32 = arith.constant 32 : i32
    %14 = vector.broadcast %c32_i32 : i32 to vector<1x256xi32>
    %15 = arith.cmpi sge, %5, %14 : vector<1x256xi32>
    %c15_i32 = arith.constant 15 : i32
    %16 = vector.broadcast %c15_i32 : i32 to vector<1x256xi32>
    %17 = arith.cmpi slt, %7, %16 : vector<1x256xi32>
    %c14_i32 = arith.constant 14 : i32
    %18 = vector.broadcast %c14_i32 : i32 to vector<1x256xi32>
    %19 = arith.cmpi slt, %7, %18 : vector<1x256xi32>
    %c1_i32 = arith.constant 1 : i32
    %20 = vector.broadcast %c1_i32 : i32 to vector<1x256xi32>
    %21 = arith.cmpi sge, %7, %20 : vector<1x256xi32>
    %c2_i32 = arith.constant 2 : i32
    %22 = vector.broadcast %c2_i32 : i32 to vector<1x256xi32>
    %23 = arith.cmpi sge, %7, %22 : vector<1x256xi32>
    %c240_i32_6 = arith.constant 240 : i32
    %24 = tpu.dynamic_rotate %1 by %c240_i32_6 dim 1 : vector<4x256xf32>, i32 -> vector<4x256xf32>
    %cst = arith.constant 0xFF800000 : f32
    %25 = vector.shape_cast %9 : vector<1x256xi1> to vector<1x256xi1>
    %26 = vector.broadcast %25 : vector<1x256xi1> to vector<4x256xi1>
    %27 = vector.broadcast %cst : f32 to vector<4x256xf32>
    %28 = arith.select %26, %24, %27 : vector<4x256xi1>, vector<4x256xf32>
    %c16_i32_7 = arith.constant 16 : i32
    %29 = tpu.dynamic_rotate %1 by %c16_i32_7 dim 1 : vector<4x256xf32>, i32 -> vector<4x256xf32>
    %cst_8 = arith.constant 0xFF800000 : f32
    %30 = vector.shape_cast %13 : vector<1x256xi1> to vector<1x256xi1>
    %31 = vector.broadcast %30 : vector<1x256xi1> to vector<4x256xi1>
    %32 = vector.broadcast %cst_8 : f32 to vector<4x256xf32>
    %33 = arith.select %31, %29, %32 : vector<4x256xi1>, vector<4x256xf32>
    %34 = arith.maximumf %28, %33 : vector<4x256xf32>
    %35 = arith.maximumf %1, %34 : vector<4x256xf32>
    %c224_i32_9 = arith.constant 224 : i32
    %36 = tpu.dynamic_rotate %1 by %c224_i32_9 dim 1 : vector<4x256xf32>, i32 -> vector<4x256xf32>
    %cst_10 = arith.constant 0xFF800000 : f32
    %37 = vector.shape_cast %11 : vector<1x256xi1> to vector<1x256xi1>
    %38 = vector.broadcast %37 : vector<1x256xi1> to vector<4x256xi1>
    %39 = vector.broadcast %cst_10 : f32 to vector<4x256xf32>
    %40 = arith.select %38, %36, %39 : vector<4x256xi1>, vector<4x256xf32>
    %c32_i32_11 = arith.constant 32 : i32
    %41 = tpu.dynamic_rotate %1 by %c32_i32_11 dim 1 : vector<4x256xf32>, i32 -> vector<4x256xf32>
    %cst_12 = arith.constant 0xFF800000 : f32
    %42 = vector.shape_cast %15 : vector<1x256xi1> to vector<1x256xi1>
    %43 = vector.broadcast %42 : vector<1x256xi1> to vector<4x256xi1>
    %44 = vector.broadcast %cst_12 : f32 to vector<4x256xf32>
    %45 = arith.select %43, %41, %44 : vector<4x256xi1>, vector<4x256xf32>
    %46 = arith.maximumf %40, %45 : vector<4x256xf32>
    %47 = arith.maximumf %35, %46 : vector<4x256xf32>
    %c255_i32 = arith.constant 255 : i32
    %48 = tpu.dynamic_rotate %47 by %c255_i32 dim 1 : vector<4x256xf32>, i32 -> vector<4x256xf32>
    %cst_13 = arith.constant 0xFF800000 : f32
    %49 = vector.shape_cast %17 : vector<1x256xi1> to vector<1x256xi1>
    %50 = vector.broadcast %49 : vector<1x256xi1> to vector<4x256xi1>
    %51 = vector.broadcast %cst_13 : f32 to vector<4x256xf32>
    %52 = arith.select %50, %48, %51 : vector<4x256xi1>, vector<4x256xf32>
    %c1_i32_14 = arith.constant 1 : i32
    %53 = tpu.dynamic_rotate %47 by %c1_i32_14 dim 1 : vector<4x256xf32>, i32 -> vector<4x256xf32>
    %cst_15 = arith.constant 0xFF800000 : f32
    %54 = vector.shape_cast %21 : vector<1x256xi1> to vector<1x256xi1>
    %55 = vector.broadcast %54 : vector<1x256xi1> to vector<4x256xi1>
    %56 = vector.broadcast %cst_15 : f32 to vector<4x256xf32>
    %57 = arith.select %55, %53, %56 : vector<4x256xi1>, vector<4x256xf32>
    %58 = arith.maximumf %52, %57 : vector<4x256xf32>
    %59 = arith.maximumf %47, %58 : vector<4x256xf32>
    %c254_i32 = arith.constant 254 : i32
    %60 = tpu.dynamic_rotate %47 by %c254_i32 dim 1 : vector<4x256xf32>, i32 -> vector<4x256xf32>
    %cst_16 = arith.constant 0xFF800000 : f32
    %61 = vector.shape_cast %19 : vector<1x256xi1> to vector<1x256xi1>
    %62 = vector.broadcast %61 : vector<1x256xi1> to vector<4x256xi1>
    %63 = vector.broadcast %cst_16 : f32 to vector<4x256xf32>
    %64 = arith.select %62, %60, %63 : vector<4x256xi1>, vector<4x256xf32>
    %c2_i32_17 = arith.constant 2 : i32
    %65 = tpu.dynamic_rotate %47 by %c2_i32_17 dim 1 : vector<4x256xf32>, i32 -> vector<4x256xf32>
    %cst_18 = arith.constant 0xFF800000 : f32
    %66 = vector.shape_cast %23 : vector<1x256xi1> to vector<1x256xi1>
    %67 = vector.broadcast %66 : vector<1x256xi1> to vector<4x256xi1>
    %68 = vector.broadcast %cst_18 : f32 to vector<4x256xf32>
    %69 = arith.select %67, %65, %68 : vector<4x256xi1>, vector<4x256xf32>
    %70 = arith.maximumf %64, %69 : vector<4x256xf32>
    %71 = arith.maximumf %59, %70 : vector<4x256xf32>
    %c0_19 = arith.constant 0 : index
    %c2 = arith.constant 2 : index
    %c0_20 = arith.constant 0 : index
    %c0_21 = arith.constant 0 : index
    %72 = vector.load %arg3[%c0_19, %c2, %c0_20, %c0_21] : memref<1x4x4x256xf32, #tpu.memory_space<vmem>>, vector<1x1x4x256xf32>
    %73 = vector.shape_cast %72 : vector<1x1x4x256xf32> to vector<4x256xf32>
    %74 = vector.shape_cast %71 : vector<4x256xf32> to vector<1x1x4x256xf32>
    tpu.vector_store %arg3[%c0_19, %c2, %c0_20, %c0_21], %74 {strides = array<i32>} : memref<1x4x4x256xf32, #tpu.memory_space<vmem>>, vector<1x1x4x256xf32>,
    %c240_i32_22 = arith.constant 240 : i32
    %75 = tpu.dynamic_rotate %71 by %c240_i32_22 dim 1 : vector<4x256xf32>, i32 -> vector<4x256xf32>
    %cst_23 = arith.constant 0xFF800000 : f32
    %76 = vector.shape_cast %9 : vector<1x256xi1> to vector<1x256xi1>
    %77 = vector.broadcast %76 : vector<1x256xi1> to vector<4x256xi1>
    %78 = vector.broadcast %cst_23 : f32 to vector<4x256xf32>
    %79 = arith.select %77, %75, %78 : vector<4x256xi1>, vector<4x256xf32>
    %c16_i32_24 = arith.constant 16 : i32
    %80 = tpu.dynamic_rotate %71 by %c16_i32_24 dim 1 : vector<4x256xf32>, i32 -> vector<4x256xf32>
    %cst_25 = arith.constant 0xFF800000 : f32
    %81 = vector.shape_cast %13 : vector<1x256xi1> to vector<1x256xi1>
    %82 = vector.broadcast %81 : vector<1x256xi1> to vector<4x256xi1>
    %83 = vector.broadcast %cst_25 : f32 to vector<4x256xf32>
    %84 = arith.select %82, %80, %83 : vector<4x256xi1>, vector<4x256xf32>
    %85 = arith.maximumf %79, %84 : vector<4x256xf32>
    %86 = arith.maximumf %71, %85 : vector<4x256xf32>
    %c224_i32_26 = arith.constant 224 : i32
    %87 = tpu.dynamic_rotate %71 by %c224_i32_26 dim 1 : vector<4x256xf32>, i32 -> vector<4x256xf32>
    %cst_27 = arith.constant 0xFF800000 : f32
    %88 = vector.shape_cast %11 : vector<1x256xi1> to vector<1x256xi1>
    %89 = vector.broadcast %88 : vector<1x256xi1> to vector<4x256xi1>
    %90 = vector.broadcast %cst_27 : f32 to vector<4x256xf32>
    %91 = arith.select %89, %87, %90 : vector<4x256xi1>, vector<4x256xf32>
    %c32_i32_28 = arith.constant 32 : i32
    %92 = tpu.dynamic_rotate %71 by %c32_i32_28 dim 1 : vector<4x256xf32>, i32 -> vector<4x256xf32>
    %cst_29 = arith.constant 0xFF800000 : f32
    %93 = vector.shape_cast %15 : vector<1x256xi1> to vector<1x256xi1>
    %94 = vector.broadcast %93 : vector<1x256xi1> to vector<4x256xi1>
    %95 = vector.broadcast %cst_29 : f32 to vector<4x256xf32>
    %96 = arith.select %94, %92, %95 : vector<4x256xi1>, vector<4x256xf32>
    %97 = arith.maximumf %91, %96 : vector<4x256xf32>
    %98 = arith.maximumf %86, %97 : vector<4x256xf32>
    %c255_i32_30 = arith.constant 255 : i32
    %99 = tpu.dynamic_rotate %98 by %c255_i32_30 dim 1 : vector<4x256xf32>, i32 -> vector<4x256xf32>
    %cst_31 = arith.constant 0xFF800000 : f32
    %100 = vector.shape_cast %17 : vector<1x256xi1> to vector<1x256xi1>
    %101 = vector.broadcast %100 : vector<1x256xi1> to vector<4x256xi1>
    %102 = vector.broadcast %cst_31 : f32 to vector<4x256xf32>
    %103 = arith.select %101, %99, %102 : vector<4x256xi1>, vector<4x256xf32>
    %c1_i32_32 = arith.constant 1 : i32
    %104 = tpu.dynamic_rotate %98 by %c1_i32_32 dim 1 : vector<4x256xf32>, i32 -> vector<4x256xf32>
    %cst_33 = arith.constant 0xFF800000 : f32
    %105 = vector.shape_cast %21 : vector<1x256xi1> to vector<1x256xi1>
    %106 = vector.broadcast %105 : vector<1x256xi1> to vector<4x256xi1>
    %107 = vector.broadcast %cst_33 : f32 to vector<4x256xf32>
    %108 = arith.select %106, %104, %107 : vector<4x256xi1>, vector<4x256xf32>
    %109 = arith.maximumf %103, %108 : vector<4x256xf32>
    %110 = arith.maximumf %98, %109 : vector<4x256xf32>
    %c254_i32_34 = arith.constant 254 : i32
    %111 = tpu.dynamic_rotate %98 by %c254_i32_34 dim 1 : vector<4x256xf32>, i32 -> vector<4x256xf32>
    %cst_35 = arith.constant 0xFF800000 : f32
    %112 = vector.shape_cast %19 : vector<1x256xi1> to vector<1x256xi1>
    %113 = vector.broadcast %112 : vector<1x256xi1> to vector<4x256xi1>
    %114 = vector.broadcast %cst_35 : f32 to vector<4x256xf32>
    %115 = arith.select %113, %111, %114 : vector<4x256xi1>, vector<4x256xf32>
    %c2_i32_36 = arith.constant 2 : i32
    %116 = tpu.dynamic_rotate %98 by %c2_i32_36 dim 1 : vector<4x256xf32>, i32 -> vector<4x256xf32>
    %cst_37 = arith.constant 0xFF800000 : f32
    %117 = vector.shape_cast %23 : vector<1x256xi1> to vector<1x256xi1>
    %118 = vector.broadcast %117 : vector<1x256xi1> to vector<4x256xi1>
    %119 = vector.broadcast %cst_37 : f32 to vector<4x256xf32>
    %120 = arith.select %118, %116, %119 : vector<4x256xi1>, vector<4x256xf32>
    %121 = arith.maximumf %115, %120 : vector<4x256xf32>
    %122 = arith.maximumf %110, %121 : vector<4x256xf32>
    %c0_38 = arith.constant 0 : index
    %c1 = arith.constant 1 : index
    %c0_39 = arith.constant 0 : index
    %c0_40 = arith.constant 0 : index
    %123 = vector.load %arg3[%c0_38, %c1, %c0_39, %c0_40] : memref<1x4x4x256xf32, #tpu.memory_space<vmem>>, vector<1x1x4x256xf32>
    %124 = vector.shape_cast %123 : vector<1x1x4x256xf32> to vector<4x256xf32>
    %125 = vector.shape_cast %122 : vector<4x256xf32> to vector<1x1x4x256xf32>
    tpu.vector_store %arg3[%c0_38, %c1, %c0_39, %c0_40], %125 {strides = array<i32>} : memref<1x4x4x256xf32, #tpu.memory_space<vmem>>, vector<1x1x4x256xf32>,
    %c240_i32_41 = arith.constant 240 : i32
    %126 = tpu.dynamic_rotate %122 by %c240_i32_41 dim 1 : vector<4x256xf32>, i32 -> vector<4x256xf32>
    %cst_42 = arith.constant 0xFF800000 : f32
    %127 = vector.shape_cast %9 : vector<1x256xi1> to vector<1x256xi1>
    %128 = vector.broadcast %127 : vector<1x256xi1> to vector<4x256xi1>
    %129 = vector.broadcast %cst_42 : f32 to vector<4x256xf32>
    %130 = arith.select %128, %126, %129 : vector<4x256xi1>, vector<4x256xf32>
    %c16_i32_43 = arith.constant 16 : i32
    %131 = tpu.dynamic_rotate %122 by %c16_i32_43 dim 1 : vector<4x256xf32>, i32 -> vector<4x256xf32>
    %cst_44 = arith.constant 0xFF800000 : f32
    %132 = vector.shape_cast %13 : vector<1x256xi1> to vector<1x256xi1>
    %133 = vector.broadcast %132 : vector<1x256xi1> to vector<4x256xi1>
    %134 = vector.broadcast %cst_44 : f32 to vector<4x256xf32>
    %135 = arith.select %133, %131, %134 : vector<4x256xi1>, vector<4x256xf32>
    %136 = arith.maximumf %130, %135 : vector<4x256xf32>
    %137 = arith.maximumf %122, %136 : vector<4x256xf32>
    %c224_i32_45 = arith.constant 224 : i32
    %138 = tpu.dynamic_rotate %122 by %c224_i32_45 dim 1 : vector<4x256xf32>, i32 -> vector<4x256xf32>
    %cst_46 = arith.constant 0xFF800000 : f32
    %139 = vector.shape_cast %11 : vector<1x256xi1> to vector<1x256xi1>
    %140 = vector.broadcast %139 : vector<1x256xi1> to vector<4x256xi1>
    %141 = vector.broadcast %cst_46 : f32 to vector<4x256xf32>
    %142 = arith.select %140, %138, %141 : vector<4x256xi1>, vector<4x256xf32>
    %c32_i32_47 = arith.constant 32 : i32
    %143 = tpu.dynamic_rotate %122 by %c32_i32_47 dim 1 : vector<4x256xf32>, i32 -> vector<4x256xf32>
    %cst_48 = arith.constant 0xFF800000 : f32
    %144 = vector.shape_cast %15 : vector<1x256xi1> to vector<1x256xi1>
    %145 = vector.broadcast %144 : vector<1x256xi1> to vector<4x256xi1>
    %146 = vector.broadcast %cst_48 : f32 to vector<4x256xf32>
    %147 = arith.select %145, %143, %146 : vector<4x256xi1>, vector<4x256xf32>
    %148 = arith.maximumf %142, %147 : vector<4x256xf32>
    %149 = arith.maximumf %137, %148 : vector<4x256xf32>
    %c255_i32_49 = arith.constant 255 : i32
    %150 = tpu.dynamic_rotate %149 by %c255_i32_49 dim 1 : vector<4x256xf32>, i32 -> vector<4x256xf32>
    %cst_50 = arith.constant 0xFF800000 : f32
    %151 = vector.shape_cast %17 : vector<1x256xi1> to vector<1x256xi1>
    %152 = vector.broadcast %151 : vector<1x256xi1> to vector<4x256xi1>
    %153 = vector.broadcast %cst_50 : f32 to vector<4x256xf32>
    %154 = arith.select %152, %150, %153 : vector<4x256xi1>, vector<4x256xf32>
    %c1_i32_51 = arith.constant 1 : i32
    %155 = tpu.dynamic_rotate %149 by %c1_i32_51 dim 1 : vector<4x256xf32>, i32 -> vector<4x256xf32>
    %cst_52 = arith.constant 0xFF800000 : f32
    %156 = vector.shape_cast %21 : vector<1x256xi1> to vector<1x256xi1>
    %157 = vector.broadcast %156 : vector<1x256xi1> to vector<4x256xi1>
    %158 = vector.broadcast %cst_52 : f32 to vector<4x256xf32>
    %159 = arith.select %157, %155, %158 : vector<4x256xi1>, vector<4x256xf32>
    %160 = arith.maximumf %154, %159 : vector<4x256xf32>
    %161 = arith.maximumf %149, %160 : vector<4x256xf32>
    %c254_i32_53 = arith.constant 254 : i32
    %162 = tpu.dynamic_rotate %149 by %c254_i32_53 dim 1 : vector<4x256xf32>, i32 -> vector<4x256xf32>
    %cst_54 = arith.constant 0xFF800000 : f32
    %163 = vector.shape_cast %19 : vector<1x256xi1> to vector<1x256xi1>
    %164 = vector.broadcast %163 : vector<1x256xi1> to vector<4x256xi1>
    %165 = vector.broadcast %cst_54 : f32 to vector<4x256xf32>
    %166 = arith.select %164, %162, %165 : vector<4x256xi1>, vector<4x256xf32>
    %c2_i32_55 = arith.constant 2 : i32
    %167 = tpu.dynamic_rotate %149 by %c2_i32_55 dim 1 : vector<4x256xf32>, i32 -> vector<4x256xf32>
    %cst_56 = arith.constant 0xFF800000 : f32
    %168 = vector.shape_cast %23 : vector<1x256xi1> to vector<1x256xi1>
    %169 = vector.broadcast %168 : vector<1x256xi1> to vector<4x256xi1>
    %170 = vector.broadcast %cst_56 : f32 to vector<4x256xf32>
    %171 = arith.select %169, %167, %170 : vector<4x256xi1>, vector<4x256xf32>
    %172 = arith.maximumf %166, %171 : vector<4x256xf32>
    %173 = arith.maximumf %161, %172 : vector<4x256xf32>
    %c0_57 = arith.constant 0 : index
    %c0_58 = arith.constant 0 : index
    %c0_59 = arith.constant 0 : index
    %c0_60 = arith.constant 0 : index
    %174 = vector.load %arg3[%c0_57, %c0_58, %c0_59, %c0_60] : memref<1x4x4x256xf32, #tpu.memory_space<vmem>>, vector<1x1x4x256xf32>
    %175 = vector.shape_cast %174 : vector<1x1x4x256xf32> to vector<4x256xf32>
    %176 = vector.shape_cast %173 : vector<4x256xf32> to vector<1x1x4x256xf32>
    tpu.vector_store %arg3[%c0_57, %c0_58, %c0_59, %c0_60], %176 {strides = array<i32>} : memref<1x4x4x256xf32, #tpu.memory_space<vmem>>, vector<1x1x4x256xf32>,
    return
  }
  func.func @transform_0(%arg0: i32, %arg1: i32) -> (i32, i32, i32) {
    %c0_i32 = arith.constant 0 : i32
    %c0_i32_0 = arith.constant 0 : i32
    return %arg0, %arg1, %c0_i32 : i32, i32, i32
  }
  func.func @transform_1(%arg0: i32, %arg1: i32) -> (i32, i32, i32, i32) {
    %c0_i32 = arith.constant 0 : i32
    %c0_i32_0 = arith.constant 0 : i32
    %c0_i32_1 = arith.constant 0 : i32
    return %arg0, %c0_i32, %arg1, %c0_i32_0 : i32, i32, i32, i32
  }
}

</mosaic_0001>

<bundles_post_ra>
// kernel: tpu_custom_call.1
= control target key start
LH: loop header
LB: loop body
LE: loop exit
PB: predicated region body
PF: predicated region fallthrough
CT: control target
= control target key end

     0   :  { %6 = vsyncpa [#allocation3], 0  ;;  %s1287_s0 = inlined_call_operand.hbm [shape: f32[2,4,256], index: 0, kind: input, shape index: {}]   ;;  %s1288_s1 = inlined_call_operand.hbm [shape: f32[2,4,4,256], index: 1, kind: output, shape index: {}]  }
   0x1   :  { %8 = vsyncpa [#allocation3 + $0x1], 0 }
   0x2   :  { %9 = vsyncpa [#allocation4], 0 }
   0x3   :  { %11 = vsyncpa [#allocation4 + $0x1], 0  ;;  %s858_s6 = smov 0   ;;  %s860_s7 = smov 0  }
   0x4   :  { %s862_s8 = smov 0   ;;  %s864_s9 = smov 0  }
   0x5   :  { %s866_s10 = smov 0   ;;  %s868_s11 = smov 0  }
   0x6 LB: > { %s629_s12 = sadd.s32 4294967295, %s834_s11   ;;  %s630_s13 = sadd.s32 4294967294, %s834_s11   ;;  %s834_s11 = sphi %s868_s11, %s17_s11   ;;  %s830_s10 = sphi %s866_s10, %s1329_s10   ;;  %s826_s9 = sphi %s864_s9, %s1328_s9   ;;  %s822_s8 = sphi %s862_s8, %s1327_s8   ;;  %s818_s7 = sphi %s860_s7, %s1326_s7   ;;  %s814_s6 = sphi %s858_s6, %s1325_s6  }
   0x7   : > { %s29_s14 = sadd.s32 1, %s830_s10  ;;  %s38_s15 = sadd.s32 1, %s822_s8 }
   0x8   : > { %p31_p0 = scmp.ge.s32.totalorder %s29_s14, 2  ;;  %p45_p1 = scmp.ne.s32.totalorder %s822_s8, %s818_s7 }
   0x9   : > { %p46_p2 = scmp.eq.s32.totalorder %s834_s11, 0  ;;  %p51_p3 = scmp.ne.s32.totalorder %s818_s7, %s814_s6 }
   0xa   : > { %s1331_s14 = smov (%p31_p0, %s29_s14), 0  ;;  %p52_p5 = scmp.eq.s32.totalorder %s629_s12, 0 }
   0xb   : > { %p899_p4 = por %p46_p2, %p45_p1  ;;  %s33_s17 = ssub.s32 %s830_s10, %s1331_s14 }
   0xc   : > { %p77_p6 = scmp.eq.s32.totalorder %s629_s12, 1  ;;  %p36_p7 = scmp.eq.s32.totalorder %s33_s17, 0 }
   0xd   : > { %p905_p8 = por %p52_p5, %p51_p3  ;;  %p83_p10 = scmp.eq.s32.totalorder %s630_s13, 1 }
   0xe   : > { %p909_p9 = por %p77_p6, %p45_p1  ;;  %p661_p13 = scmp.lt.s32.totalorder %s834_s11, 2 }
   0xf   : > { %s914_s20 = scalar_select %p36_p7, %s822_s8, %s38_s15  }
  0x10   : > { %s1301_s19 = scalar_select %p909_p9, 1, 0 }
  0x11   : > { %p916_p11 = por %p83_p10, %p51_p3  ;;  %s103_s22 = sand.u32 1, %s822_s8  }
  0x12   : > { %s633_s23 = sshll.u32 %s103_s22, 3  ;;  %s647_s24 = sshll.u32 %s830_s10, 7 }
  0x13   : > { %s1302_s21 = scalar_select %p916_p11, 1, 0 }
  0x14   : > { %s927_s27 = scalar_lea.hbm %s1287_s0, %s647_s24  ;;  %s107_s28 = scalar_lea.vmem [#allocation2], %s633_s23 }
  0x15   : > { %s117_s29 = sshll.u32 %s107_s28, 4  ;;  %p933_p0 = pnand %p661_p13, %p899_p4  ;;  %s929_s29 = int_to_ptr.vmem [resolvable:$true] %s117_s29 }
  0x16   : > { %s104_s2 = scalar_lea.sflag [#allocation3], %s103_s22  ;;  %s722_s3 = scalar_lea.hbm %s927_s27, 128 }
  0x17   : > { %p723_p3 = scmp.ne.s32.totalorder %s927_s27, %s722_s3  ;;  %p724_p5 = pneg %p933_p0 }
  0x18   : > { %s727_s12 = scalar_lea.hbm %s1287_s0, 256  ;;  %p728_p4 = scmp.lt.u32.totalorder %s927_s27, %s1287_s0 }
  0x19   : > { %p725_p6 = pnand %p724_p5, %p723_p3  ;;  %p729_p10 = scmp.lt.u32.totalorder %s727_s12, %s722_s3 }
  0x1a   : > { %p731_p12 = scmp.lt.u32.totalorder %s722_s3, %s927_s27 }
  0x1b   : > { %p726_p7 = pneg %p725_p6  ;;  %p730_p13 = por %p729_p10, %p728_p4 }
  0x1d   : > { %p732_p1 = por %p731_p12, %p730_p13 }
  0x1f   : > { %p733_p2 = pnand %p732_p1, %p726_p7 }
  0x21   : > { %736 = shalt.err (!%p733_p2)
}
  0x22   : > { %s737_s16 = scalar_lea.vmem %s929_s29, 128  ;;  %s836_s17 = smov [#allocation2]  }
  0x23   : > { %p738_p3 = scmp.ne.s32.totalorder %s929_s29, %s737_s16  ;;  %s742_s22 = sshll.u32 %s836_s17, 4  ;;  %s743_s22 = int_to_ptr.vmem [resolvable:$false] %s742_s22 }
  0x24   : > { %s744_s23 = scalar_lea.vmem %s743_s22, 256  ;;  %p745_p9 = scmp.lt.s32.totalorder %s929_s29, %s743_s22 }
  0x25   : > { %p740_p6 = pnand %p738_p3, %p724_p5  ;;  %p746_p4 = scmp.lt.s32.totalorder %s744_s23, %s737_s16 }
  0x27   : > { %p741_p11 = pneg %p740_p6  ;;  %p747_p10 = por %p746_p4, %p745_p9 }
  0x29   : > { %p748_p12 = pnand %p747_p10, %p741_p11 }
  0x2b   : > { %751 = shalt.err (!%p748_p12)
}
  0x2c   : > { %656 = dma.hbm_to_vmem [thread:$0]  (!%p933_p0), %s927_s27, 128, %s929_s29, %s104_s2  }
  0x2d   : > { %p1304_p1 = scmp.lt.s32.totalorder %s834_s11, 3  ;;  %p1305_p2 = scmp.ge.s32.totalorder %s834_s11, 1 }
  0x2f   : > { %p123_p5 = pnand %p1305_p2, %p1304_p1 }
  0x30   : > { %s969_s24 = sand.u32 (!%p123_p5), 1, %s818_s7  }
  0x31   : > { %126 = sbr.rel (%p123_p5) target bundleno = 894 (0x37e), region = 24  ;;  %s637_s25 = sshll.u32 (!%p123_p5), %s969_s24, 3 }
  0x32   : > { %s129_s26 = scalar_lea.sflag (!%p123_p5), [#allocation3], %s969_s24  ;;  %s132_s28 = scalar_lea.vmem (!%p123_p5), [#allocation2], %s637_s25 }
  0x38   : > { %805 = dma.done.wait (%p905_p8), %s129_s26, 128  }
  0x39   : > { %807 = vsyncadd (%p905_p8), %s129_s26, 4294967168  ;;  %s638_s27 = sshll.u32 %s969_s24, 5  ;;  %v151_v0 = vld [vmem:[%s132_s28] sm:$0xff]  ;;  %s837_s30 = smov 16   ;;  %v154_v2 = vlaneseq }
  0x3a   : > { %s978_s29 = scalar_lea.vmem [#allocation5], %s638_s27  ;;  %203 = vrot.lane.b32.xlu1 %v151_v0, %s837_s30  ;;  %s838_s2 = smov 112   ;;  %v188_v1 = vcombine.high %v151_v0, %v151_v0 }
  0x3b   : > { %639 = vst [vmem:[%s978_s29 + $0x18] sm:$0xff] %v151_v0  ;;  %190 = vrot.lane.b32.xlu0 %v151_v0, %s838_s2  ;;  %s839_s3 = smov 96   ;;  %s840_s18 = smov 32   ;;  %v989_v3 = vand.u32 127, %v154_v2 }
  0x3c   : > { %s841_s4 = smov 127   ;;  %s842_s5 = smov 1  }
  0x3d   : > { %vm207_vm0 = vcmp.lt.s32.totalorder %v989_v3, 16  ;;  %v993_v6 = vadd.s32 128, %v989_v3  ;;  %vm175_vm1 = vcmp.ge.s32.totalorder %v989_v3, 16  ;;  %vm194_vm2 = vcmp.lt.s32.totalorder %v989_v3, 112  ;;  %s843_s12 = smov 126   ;;  %s844_s13 = smov 2  }
  0x3e   : > { %205 = vrot.lane.b32.xlu1 %v188_v1, %s837_s30  ;;  %vm1297_vm3 = vcmp.lt.s32.totalorder %v989_v3, 96  ;;  %vm1295_vm6 = vcmp.lt.s32.totalorder %v989_v3, 32  ;;  %vm1294_vm7 = vcmp.ge.s32.totalorder %v989_v3, 32  ;;  %v1035_v35 = vand.u32 15, %v989_v3  ;;  %s542_s15 = sshll.u32 %s978_s29, 4  ;;  %s648_s16 = sshll.u32 %s826_s9, 9  ;;  %s1232_s15 = int_to_ptr.vmem [resolvable:$true] %s542_s15 }
  0x3f   : > { %223 = vrot.lane.b32.xlu0 %v151_v0, %s839_s3  ;;  %vm1298_vm4 = vcmp.lt.s32.totalorder %v993_v6, 240  ;;  %vm1296_vm5 = vcmp.lt.s32.totalorder %v993_v6, 224  ;;  %v1038_v36 = vand.u32 15, %v993_v6  ;;  %vm263_vm8 = vcmp.lt.s32.totalorder %v989_v3, 127  ;;  %s1237_s23 = scalar_lea.hbm %s1288_s1, %s648_s16  ;;  %s527_s25 = scalar_lea.sflag [#allocation4], %s969_s24 }
  0x40   : > { %vm1290_vm9 = vcmp.lt.s32.totalorder %v989_v3, 1  ;;  %vm1291_vm10 = vcmp.ge.s32.totalorder %v1035_v35, 1  ;;  %vm1292_vm12 = vcmp.lt.s32.totalorder %v1035_v35, 15  ;;  %vm296_vm14 = vcmp.lt.s32.totalorder %v989_v3, 126  ;;  %s752_s26 = scalar_lea.vmem %s1232_s15, 512  ;;  %p1322_p9 = scmp.ne.s32.totalorder %s1301_s19, 0 }
  0x41   : > { %vm184_vm11 = vcmp.ge.s32.totalorder %v1038_v36, 1  ;;  %vm1293_vm13 = vcmp.lt.s32.totalorder %v1038_v36, 15  ;;  %vm181_vm15 = vcmp.lt.s32.totalorder %v1035_v35, 14  ;;  %p753_p8 = scmp.ne.s32.totalorder %s1232_s15, %s752_s26  ;;  %s845_s9 = smov [#allocation5]  }
  0x42   : > { %225 = vrot.lane.b32.xlu1 %v188_v1, %s839_s3  ;;  %s756_s28 = sshll.u32 %s845_s9, 4  ;;  %s757_s28 = int_to_ptr.vmem [resolvable:$false] %s756_s28 }
  0x43   : > { %192 = vrot.lane.b32.xlu0 %v188_v1, %s838_s2  ;;  %p754_p11 = pnand %p753_p8, %p1322_p9  ;;  %s758_s27 = scalar_lea.vmem %s757_s28, 1024 }
  0x44   : > { %p759_p7 = scmp.lt.s32.totalorder %s1232_s15, %s757_s28  ;;  %p760_p13 = scmp.lt.s32.totalorder %s758_s27, %s752_s26 }
  0x45   : > { %p755_p0 = pneg %p754_p11 }
  0x46   : > { %238 = vrot.lane.b32.xlu1 %v188_v1, %s840_s18  ;;  %p761_p3 = por %p760_p13, %p759_p7 }
  0x47   : > { %236 = vrot.lane.b32.xlu0 %v151_v0, %s840_s18 }
  0x48   : > { %p762_p6 = pnand %p761_p3, %p755_p0 }
  0xac   : > { %v204_v4 = vpop.permute.xlu1 %203 }
  0xad   : > { %v191_v5 = vpop.permute.xlu0 %190 }
  0xb0   : > { %v206_v8 = vpop.permute.xlu1 %205 }
  0xb1   : > { %v224_v7 = vpop.permute.xlu0 %223  ;;  %v209_v9 = vsel %vm207_vm0, %v206_v8, %v204_v4  ;;  %v208_v15 = vsel %vm207_vm0, %v204_v4, %v206_v8 }
  0xb2   : > { %v214_v12 = vsel %vm175_vm1, %v209_v9, -inf }
  0xb4   : > { %v226_v10 = vpop.permute.xlu1 %225 }
  0xb5   : > { %v193_v11 = vpop.permute.xlu0 %192  ;;  %v229_v16 = vsel %vm1297_vm3, %v226_v10, %v224_v7  ;;  %v228_v26 = vsel %vm1297_vm3, %v224_v7, %v226_v10 }
  0xb6   : > { %v195_v13 = vsel %vm194_vm2, %v191_v5, %v193_v11  ;;  %v196_v14 = vsel %vm194_vm2, %v193_v11, %v191_v5  ;;  %v235_v22 = vsel %vm1296_vm5, %v229_v16, -inf }
  0xb7   : > { %v202_v17 = vsel %vm1298_vm4, %v196_v14, -inf  ;;  %v216_v18 = vmax.f32 %v195_v13, %v214_v12 }
  0xb8   : > { %v217_v19 = vmax.f32 %v202_v17, %v208_v15  ;;  %v239_v20 = vpop.permute.xlu1 %238 }
  0xb9   : > { %v237_v21 = vpop.permute.xlu0 %236 }
  0xba   : > { %v220_v23 = vcombine.low %v216_v18, %v217_v19  ;;  %v241_v24 = vsel %vm1295_vm6, %v237_v21, %v239_v20  ;;  %v242_v25 = vsel %vm1295_vm6, %v239_v20, %v237_v21 }
  0xbb   : > { %v247_v27 = vsel %vm1294_vm7, %v242_v25, -inf  ;;  %v250_v28 = vmax.f32 %v235_v22, %v241_v24 }
  0xbc   : > { %v249_v29 = vmax.f32 %v228_v26, %v247_v27  ;;  %v222_v30 = vmax.f32 %v151_v0, %v220_v23 }
  0xbe   : > { %v253_v31 = vcombine.low %v249_v29, %v250_v28 }
  0xc0   : > { %v255_v32 = vmax.f32 %v222_v30, %v253_v31 }
  0xc2   : > { %259 = vrot.lane.b32.xlu0 %v255_v32, %s841_s4  ;;  %v257_v33 = vcombine.high %v255_v32, %v255_v32 }
  0xc4   : > { %261 = vrot.lane.b32.xlu1 %v257_v33, %s841_s4 }
  0xc6   : > { %272 = vrot.lane.b32.xlu0 %v255_v32, %s842_s5 }
  0xc8   : > { %274 = vrot.lane.b32.xlu1 %v257_v33, %s842_s5 }
  0xca   : > { %292 = vrot.lane.b32.xlu0 %v255_v32, %s843_s12 }
  0xcc   : > { %294 = vrot.lane.b32.xlu1 %v257_v33, %s843_s12 }
  0xce   : > { %305 = vrot.lane.b32.xlu0 %v255_v32, %s844_s13 }
  0xd0   : > { %307 = vrot.lane.b32.xlu1 %v257_v33, %s844_s13 }
 0x134   : > { %v260_v34 = vpop.permute.xlu0 %259 }
 0x136   : > { %v262_v37 = vpop.permute.xlu1 %261 }
 0x137   : > { %v264_v40 = vsel %vm263_vm8, %v260_v34, %v262_v37  ;;  %v265_v41 = vsel %vm263_vm8, %v262_v37, %v260_v34 }
 0x138   : > { %v273_v38 = vpop.permute.xlu0 %272  ;;  %v270_v47 = vsel %vm1292_vm12, %v264_v40, -inf  ;;  %v271_v48 = vsel %vm1293_vm13, %v265_v41, -inf  ;;  %vm185_vm12 = vcmp.ge.s32.totalorder %v1035_v35, 2  ;;  %vm186_vm13 = vcmp.ge.s32.totalorder %v1038_v36, 2 }
 0x13a   : > { %v275_v39 = vpop.permute.xlu1 %274 }
 0x13b   : > { %v277_v42 = vsel %vm1290_vm9, %v273_v38, %v275_v39  ;;  %v278_v43 = vsel %vm1290_vm9, %v275_v39, %v273_v38  ;;  %vm182_vm9 = vcmp.lt.s32.totalorder %v1038_v36, 14 }
 0x13c   : > { %v283_v44 = vsel %vm1291_vm10, %v278_v43, -inf  ;;  %v284_v45 = vsel %vm184_vm11, %v277_v42, -inf  ;;  %v293_v46 = vpop.permute.xlu0 %292  ;;  %vm309_vm10 = vcmp.lt.s32.totalorder %v989_v3, 2 }
 0x13d   : > { %v285_v50 = vmax.f32 %v270_v47, %v283_v44  ;;  %v286_v51 = vmax.f32 %v271_v48, %v284_v45 }
 0x13e   : > { %v295_v49 = vpop.permute.xlu1 %294 }
 0x13f   : > { %v297_v52 = vsel %vm296_vm14, %v293_v46, %v295_v49  ;;  %v298_v53 = vsel %vm296_vm14, %v295_v49, %v293_v46  ;;  %v289_v56 = vcombine.low %v285_v50, %v286_v51 }
 0x140   : > { %v306_v54 = vpop.permute.xlu0 %305  ;;  %v303_v59 = vsel %vm181_vm15, %v297_v52, -inf  ;;  %v304_v60 = vsel %vm182_vm9, %v298_v53, -inf }
 0x141   : > { %v291_v1 = vmax.f32 %v255_v32, %v289_v56 }
 0x142   : > { %v308_v55 = vpop.permute.xlu1 %307 }
 0x143   : > { %v310_v57 = vsel %vm309_vm10, %v306_v54, %v308_v55  ;;  %v311_v58 = vsel %vm309_vm10, %v308_v55, %v306_v54 }
 0x144   : > { %v316_v61 = vsel %vm185_vm12, %v311_v58, -inf  ;;  %v317_v62 = vsel %vm186_vm13, %v310_v57, -inf }
 0x145   : > { %v318_v63 = vmax.f32 %v303_v59, %v316_v61  ;;  %v319_v0 = vmax.f32 %v304_v60, %v317_v62 }
 0x147   : > { %v322_v2 = vcombine.low %v318_v63, %v319_v0 }
 0x149   : > { %v324_v4 = vmax.f32 %v291_v1, %v322_v2 }
 0x14b   : > { %640 = vst [vmem:[%s978_s29 + $0x10] sm:$0xff] %v324_v4  ;;  %330 = vrot.lane.b32.xlu0 %v324_v4, %s838_s2  ;;  %v328_v5 = vcombine.high %v324_v4, %v324_v4 }
 0x14d   : > { %332 = vrot.lane.b32.xlu1 %v328_v5, %s838_s2 }
 0x14f   : > { %338 = vrot.lane.b32.xlu0 %v324_v4, %s837_s30 }
 0x151   : > { %340 = vrot.lane.b32.xlu1 %v328_v5, %s837_s30 }
 0x153   : > { %353 = vrot.lane.b32.xlu0 %v324_v4, %s839_s3 }
 0x155   : > { %355 = vrot.lane.b32.xlu1 %v328_v5, %s839_s3 }
 0x157   : > { %361 = vrot.lane.b32.xlu0 %v324_v4, %s840_s18 }
 0x159   : > { %363 = vrot.lane.b32.xlu1 %v328_v5, %s840_s18 }
 0x1bd   : > { %v331_v7 = vpop.permute.xlu0 %330 }
 0x1bf   : > { %v333_v8 = vpop.permute.xlu1 %332 }
 0x1c0   : > { %v335_v11 = vsel %vm194_vm2, %v333_v8, %v331_v7  ;;  %v334_v16 = vsel %vm194_vm2, %v331_v7, %v333_v8 }
 0x1c1   : > { %v339_v9 = vpop.permute.xlu0 %338  ;;  %v337_v17 = vsel %vm1298_vm4, %v335_v11, -inf  ;;  %vm1310_vm4 = vcmp.lt.s32.totalorder %v1038_v36, 15 }
 0x1c3   : > { %v341_v10 = vpop.permute.xlu1 %340 }
 0x1c4   : > { %v343_v12 = vsel %vm207_vm0, %v341_v10, %v339_v9  ;;  %v342_v13 = vsel %vm207_vm0, %v339_v9, %v341_v10 }
 0x1c5   : > { %v344_v14 = vsel %vm175_vm1, %v343_v12, -inf  ;;  %v354_v15 = vpop.permute.xlu0 %353  ;;  %v347_v20 = vmax.f32 %v337_v17, %v342_v13 }
 0x1c6   : > { %v346_v19 = vmax.f32 %v334_v16, %v344_v14 }
 0x1c7   : > { %v356_v18 = vpop.permute.xlu1 %355 }
 0x1c8   : > { %v358_v21 = vsel %vm1297_vm3, %v356_v18, %v354_v15  ;;  %v350_v24 = vcombine.low %v346_v19, %v347_v20  ;;  %v357_v28 = vsel %vm1297_vm3, %v354_v15, %v356_v18  ;;  %vm1309_vm3 = vcmp.lt.s32.totalorder %v1035_v35, 15 }
 0x1c9   : > { %v362_v22 = vpop.permute.xlu0 %361  ;;  %v360_v25 = vsel %vm1296_vm5, %v358_v21, -inf  ;;  %vm1308_vm5 = vcmp.ge.s32.totalorder %v1035_v35, 1 }
 0x1ca   : > { %v352_v32 = vmax.f32 %v324_v4, %v350_v24 }
 0x1cb   : > { %v364_v23 = vpop.permute.xlu1 %363 }
 0x1cc   : > { %v365_v26 = vsel %vm1295_vm6, %v362_v22, %v364_v23  ;;  %v366_v27 = vsel %vm1295_vm6, %v364_v23, %v362_v22 }
 0x1cd   : > { %v367_v29 = vsel %vm1294_vm7, %v366_v27, -inf  ;;  %v370_v30 = vmax.f32 %v360_v25, %v365_v26  ;;  %vm1306_vm7 = vcmp.lt.s32.totalorder %v989_v3, 1 }
 0x1ce   : > { %v369_v31 = vmax.f32 %v357_v28, %v367_v29  ;;  %vm1307_vm6 = vmmov %vm1306_vm7 }
 0x1d0   : > { %v373_v33 = vcombine.low %v369_v31, %v370_v30 }
 0x1d2   : > { %v375_v34 = vmax.f32 %v352_v32, %v373_v33 }
 0x1d4   : > { %379 = vrot.lane.b32.xlu0 %v375_v34, %s841_s4  ;;  %v377_v37 = vcombine.high %v375_v34, %v375_v34 }
 0x1d6   : > { %381 = vrot.lane.b32.xlu1 %v377_v37, %s841_s4 }
 0x1d8   : > { %387 = vrot.lane.b32.xlu0 %v375_v34, %s842_s5 }
 0x1da   : > { %389 = vrot.lane.b32.xlu1 %v377_v37, %s842_s5 }
 0x1dc   : > { %402 = vrot.lane.b32.xlu0 %v375_v34, %s843_s12 }
 0x1de   : > { %404 = vrot.lane.b32.xlu1 %v377_v37, %s843_s12 }
 0x1e0   : > { %410 = vrot.lane.b32.xlu0 %v375_v34, %s844_s13 }
 0x1e2   : > { %412 = vrot.lane.b32.xlu1 %v377_v37, %s844_s13 }
 0x246   : > { %v380_v38 = vpop.permute.xlu0 %379 }
 0x248   : > { %v382_v39 = vpop.permute.xlu1 %381 }
 0x249   : > { %v383_v42 = vsel %vm263_vm8, %v380_v38, %v382_v39  ;;  %v384_v43 = vsel %vm263_vm8, %v382_v39, %v380_v38 }
 0x24a   : > { %v388_v40 = vpop.permute.xlu0 %387  ;;  %v385_v49 = vsel %vm1309_vm3, %v383_v42, -inf  ;;  %v386_v50 = vsel %vm1310_vm4, %v384_v43, -inf  ;;  %vm1311_vm3 = vcmp.lt.s32.totalorder %v993_v6, 240  ;;  %vm1312_vm4 = vcmp.lt.s32.totalorder %v989_v3, 96 }
 0x24c   : > { %v390_v41 = vpop.permute.xlu1 %389 }
 0x24d   : > { %v391_v44 = vsel %vm1306_vm7, %v388_v40, %v390_v41  ;;  %v392_v45 = vsel %vm1307_vm6, %v390_v41, %v388_v40  ;;  %vm1317_vm6 = vcmp.ge.s32.totalorder %v989_v3, 32 }
 0x24e   : > { %v393_v46 = vsel %vm1308_vm5, %v392_v45, -inf  ;;  %v394_v47 = vsel %vm184_vm11, %v391_v44, -inf  ;;  %v403_v48 = vpop.permute.xlu0 %402  ;;  %vm1316_vm5 = vmmov %vm1312_vm4 }
 0x24f   : > { %v395_v52 = vmax.f32 %v385_v49, %v393_v46  ;;  %v396_v53 = vmax.f32 %v386_v50, %v394_v47 }
 0x250   : > { %v405_v51 = vpop.permute.xlu1 %404 }
 0x251   : > { %v406_v54 = vsel %vm296_vm14, %v403_v48, %v405_v51  ;;  %v407_v55 = vsel %vm296_vm14, %v405_v51, %v403_v48  ;;  %v399_v58 = vcombine.low %v395_v52, %v396_v53 }
 0x252   : > { %v411_v56 = vpop.permute.xlu0 %410  ;;  %v408_v61 = vsel %vm181_vm15, %v406_v54, -inf  ;;  %v409_v62 = vsel %vm182_vm9, %v407_v55, -inf }
 0x253   : > { %v401_v4 = vmax.f32 %v375_v34, %v399_v58 }
 0x254   : > { %v413_v57 = vpop.permute.xlu1 %412 }
 0x255   : > { %v414_v59 = vsel %vm309_vm10, %v411_v56, %v413_v57  ;;  %v415_v60 = vsel %vm309_vm10, %v413_v57, %v411_v56 }
 0x256   : > { %v416_v63 = vsel %vm185_vm12, %v415_v60, -inf  ;;  %v417_v0 = vsel %vm186_vm13, %v414_v59, -inf }
 0x257   : > { %v418_v1 = vmax.f32 %v408_v61, %v416_v63  ;;  %v419_v2 = vmax.f32 %v409_v62, %v417_v0 }
 0x259   : > { %v422_v5 = vcombine.low %v418_v1, %v419_v2 }
 0x25b   : > { %v424_v7 = vmax.f32 %v401_v4, %v422_v5 }
 0x25d   : > { %641 = vst [vmem:[%s978_s29 + $0x8] sm:$0xff] %v424_v7  ;;  %430 = vrot.lane.b32.xlu0 %v424_v7, %s838_s2  ;;  %v428_v8 = vcombine.high %v424_v7, %v424_v7 }
 0x25f   : > { %432 = vrot.lane.b32.xlu1 %v428_v8, %s838_s2 }
 0x261   : > { %438 = vrot.lane.b32.xlu0 %v424_v7, %s837_s30 }
 0x263   : > { %440 = vrot.lane.b32.xlu1 %v428_v8, %s837_s30 }
 0x265   : > { %453 = vrot.lane.b32.xlu0 %v424_v7, %s839_s3 }
 0x267   : > { %455 = vrot.lane.b32.xlu1 %v428_v8, %s839_s3 }
 0x269   : > { %461 = vrot.lane.b32.xlu0 %v424_v7, %s840_s18 }
 0x26b   : > { %463 = vrot.lane.b32.xlu1 %v428_v8, %s840_s18 }
 0x2cf   : > { %v431_v9 = vpop.permute.xlu0 %430 }
 0x2d1   : > { %v433_v10 = vpop.permute.xlu1 %432 }
 0x2d2   : > { %v435_v13 = vsel %vm194_vm2, %v433_v10, %v431_v9  ;;  %v434_v18 = vsel %vm194_vm2, %v431_v9, %v433_v10 }
 0x2d3   : > { %v439_v11 = vpop.permute.xlu0 %438  ;;  %v437_v19 = vsel %vm1311_vm3, %v435_v13, -inf  ;;  %vm1318_vm3 = vmmov %vm1306_vm7 }
 0x2d5   : > { %v441_v12 = vpop.permute.xlu1 %440 }
 0x2d6   : > { %v443_v14 = vsel %vm207_vm0, %v441_v12, %v439_v11  ;;  %v442_v15 = vsel %vm207_vm0, %v439_v11, %v441_v12  ;;  %vm1313_vm0 = vcmp.lt.s32.totalorder %v993_v6, 224 }
 0x2d7   : > { %v444_v16 = vsel %vm175_vm1, %v443_v14, -inf  ;;  %v454_v17 = vpop.permute.xlu0 %453  ;;  %v447_v22 = vmax.f32 %v437_v19, %v442_v15  ;;  %vm1314_vm1 = vcmp.lt.s32.totalorder %v989_v3, 32 }
 0x2d8   : > { %v446_v21 = vmax.f32 %v434_v18, %v444_v16  ;;  %vm1315_vm2 = vmmov %vm1314_vm1 }
 0x2d9   : > { %v456_v20 = vpop.permute.xlu1 %455 }
 0x2da   : > { %v458_v23 = vsel %vm1312_vm4, %v456_v20, %v454_v17  ;;  %v450_v26 = vcombine.low %v446_v21, %v447_v22  ;;  %v457_v30 = vsel %vm1316_vm5, %v454_v17, %v456_v20  ;;  %vm1319_vm4 = vcmp.ge.s32.totalorder %v1035_v35, 1 }
 0x2db   : > { %v462_v24 = vpop.permute.xlu0 %461  ;;  %v460_v27 = vsel %vm1313_vm0, %v458_v23, -inf  ;;  %vm1320_vm0 = vcmp.lt.s32.totalorder %v1035_v35, 15 }
 0x2dc   : > { %v452_v34 = vmax.f32 %v424_v7, %v450_v26 }
 0x2dd   : > { %v464_v25 = vpop.permute.xlu1 %463 }
 0x2de   : > { %v465_v28 = vsel %vm1314_vm1, %v462_v24, %v464_v25  ;;  %v466_v29 = vsel %vm1315_vm2, %v464_v25, %v462_v24  ;;  %vm1321_vm1 = vcmp.lt.s32.totalorder %v1038_v36, 15 }
 0x2df   : > { %v467_v31 = vsel %vm1317_vm6, %v466_v29, -inf  ;;  %v470_v32 = vmax.f32 %v460_v27, %v465_v28 }
 0x2e0   : > { %v469_v33 = vmax.f32 %v457_v30, %v467_v31 }
 0x2e2   : > { %v473_v37 = vcombine.low %v469_v33, %v470_v32 }
 0x2e4   : > { %v475_v38 = vmax.f32 %v452_v34, %v473_v37 }
 0x2e6   : > { %479 = vrot.lane.b32.xlu0 %v475_v38, %s841_s4  ;;  %v477_v6 = vcombine.high %v475_v38, %v475_v38 }
 0x2e8   : > { %481 = vrot.lane.b32.xlu1 %v477_v6, %s841_s4 }
 0x2ea   : > { %487 = vrot.lane.b32.xlu0 %v475_v38, %s842_s5 }
 0x2ec   : > { %489 = vrot.lane.b32.xlu1 %v477_v6, %s842_s5 }
 0x2ee   : > { %502 = vrot.lane.b32.xlu0 %v475_v38, %s843_s12 }
 0x2f0   : > { %504 = vrot.lane.b32.xlu1 %v477_v6, %s843_s12 }
 0x2f2   : > { %510 = vrot.lane.b32.xlu0 %v475_v38, %s844_s13 }
 0x2f4   : > { %512 = vrot.lane.b32.xlu1 %v477_v6, %s844_s13 }
 0x358   : > { %v480_v39 = vpop.permute.xlu0 %479 }
 0x35a   : > { %v482_v40 = vpop.permute.xlu1 %481 }
 0x35b   : > { %v483_v43 = vsel %vm263_vm8, %v480_v39, %v482_v40  ;;  %v484_v44 = vsel %vm263_vm8, %v482_v40, %v480_v39 }
 0x35c   : > { %v488_v41 = vpop.permute.xlu0 %487  ;;  %v485_v50 = vsel %vm1320_vm0, %v483_v43, -inf  ;;  %v486_v51 = vsel %vm1321_vm1, %v484_v44, -inf }
 0x35e   : > { %v490_v42 = vpop.permute.xlu1 %489 }
 0x35f   : > { %v491_v45 = vsel %vm1306_vm7, %v488_v41, %v490_v42  ;;  %v492_v46 = vsel %vm1318_vm3, %v490_v42, %v488_v41 }
 0x360   : > { %v493_v47 = vsel %vm1319_vm4, %v492_v46, -inf  ;;  %v494_v48 = vsel %vm184_vm11, %v491_v45, -inf  ;;  %v503_v49 = vpop.permute.xlu0 %502 }
 0x361   : > { %v495_v53 = vmax.f32 %v485_v50, %v493_v47  ;;  %v496_v54 = vmax.f32 %v486_v51, %v494_v48 }
 0x362   : > { %v505_v52 = vpop.permute.xlu1 %504 }
 0x363   : > { %v506_v55 = vsel %vm296_vm14, %v503_v49, %v505_v52  ;;  %v507_v56 = vsel %vm296_vm14, %v505_v52, %v503_v49  ;;  %v499_v59 = vcombine.low %v495_v53, %v496_v54 }
 0x364   : > { %v511_v57 = vpop.permute.xlu0 %510  ;;  %v508_v62 = vsel %vm181_vm15, %v506_v55, -inf  ;;  %v509_v63 = vsel %vm182_vm9, %v507_v56, -inf }
 0x365   : > { %v501_v3 = vmax.f32 %v475_v38, %v499_v59 }
 0x366   : > { %v513_v58 = vpop.permute.xlu1 %512 }
 0x367   : > { %v514_v60 = vsel %vm309_vm10, %v511_v57, %v513_v58  ;;  %v515_v61 = vsel %vm309_vm10, %v513_v58, %v511_v57 }
 0x368   : > { %v516_v0 = vsel %vm185_vm12, %v515_v61, -inf  ;;  %v517_v1 = vsel %vm186_vm13, %v514_v60, -inf }
 0x369   : > { %v518_v2 = vmax.f32 %v508_v62, %v516_v0  ;;  %v519_v4 = vmax.f32 %v509_v63, %v517_v1 }
 0x36b   : > { %v522_v5 = vcombine.low %v518_v2, %v519_v4 }
 0x36d   : > { %v524_v35 = vmax.f32 %v501_v3, %v522_v5 }
 0x36f   : > { %525 = vst [vmem:[%s978_s29] sm:$0xff] %v524_v35 }
 0x370   : > { %765 = shalt.err (!%p762_p6)
}
 0x371   : > { %s766_s29 = scalar_lea.hbm %s1237_s23, 512  ;;  %s770_s3 = scalar_lea.hbm %s1288_s1, 1024 }
 0x372   : > { %p767_p4 = scmp.ne.s32.totalorder %s1237_s23, %s766_s29  ;;  %p771_p1 = scmp.lt.u32.totalorder %s1237_s23, %s1288_s1 }
 0x373   : > { %p772_p2 = scmp.lt.u32.totalorder %s770_s3, %s766_s29  ;;  %p774_p8 = scmp.lt.u32.totalorder %s766_s29, %s1237_s23 }
 0x374   : > { %p768_p10 = pnand %p767_p4, %p1322_p9 }
 0x375   : > { %p773_p5 = por %p772_p2, %p771_p1 }
 0x376   : > { %p769_p12 = pneg %p768_p10 }
 0x377   : > { %p775_p11 = por %p774_p8, %p773_p5 }
 0x379   : > { %p776_p0 = pnand %p775_p11, %p769_p12 }
 0x37b   : > { %779 = shalt.err (!%p776_p0)
}
 0x37c   : > { %s846_s5 = smov 128   ;;  %s847_s12 = smov 8  }
 0x37d   : > { %651 = dma.vmem_to_hbm [thread:$0]  (%p1322_p9), %s1232_s15, 512, %s1237_s23, %s527_s25, %s846_s5, %s846_s5, %s847_s12  }
 0x37e PF: > { %s557_s13 = sand.u32 1, %s814_s6   ;;  %p1323_p7 = scmp.ne.s32.totalorder %s1302_s21, 0 }
 0x37f   : > { %p1324_p13 = scmp.ge.s32.totalorder %s834_s11, 2  ;;  %s558_s16 = scalar_lea.sflag [#allocation4], %s557_s13 }
 0x381   : > { %p658_p3 = pnand %p1324_p13, %p1323_p7 }
 0x383   : > { %809 = dma.done.wait (!%p658_p3), %s558_s16, 512  }
 0x384   : > { %811 = vsyncadd (!%p658_p3), %s558_s16, 4294966784  ;;  %s17_s11 = sadd.s32 1, %s834_s11   ;;  %s1325_s6 = smov %s818_s7 }
 0x385   : > { %p14_p6 = scmp.ge.s32.totalorder %s17_s11, 4   ;;  %s1326_s7 = smov %s822_s8 }
 0x386   : > { %s1327_s8 = smov %s914_s20  ;;  %s1328_s9 = smov %s830_s10 }
 0x387   : > { %s1329_s10 = smov %s1331_s14  ;;  %16 = sbr.rel (!%p14_p6) target bundleno = 6 (0x6), region = 72 }
 0x38e   :  { %563 = vsyncpa [#allocation3], 1 }
 0x38f   :  { %565 = vsyncpa [#allocation3 + $0x1], 1 }
 0x390   :  { %566 = vsyncpa [#allocation4], 1 }
 0x391   :  { %568 = vsyncpa [#allocation4 + $0x1], 1 }

</bundles_post_ra>
